<compile_context>
chip_gen: v6e
topology: v6e:2x2x1
jax: 0.10.0
libtpu: 0.0.40
codegen_flags: <defaults>
</compile_context>

<pallas_src>
import functools

import jax
import jax.numpy as jnp
from jax.experimental import pallas as pl
from jax.experimental.pallas import tpu as pltpu


def _round_up(x, m):
    return ((x + m - 1) // m) * m


def _sine_t2v_kernel(tau_ref, w_ref, b_ref, o_ref, *, out_features):
    # tau_ref: (TB, pack*in)   w_ref: (pack*in, pack*out)
    # b_ref:   (1, pack*out)   o_ref: (TB, pack*out)
    z = jnp.dot(tau_ref[...], w_ref[...], preferred_element_type=jnp.float32)
    z = z + b_ref[...].astype(jnp.float32)          # broadcast bias over rows
    # Per-column select, repeating every `out_features` lanes:
    # columns 0..out_features-2 of each packed group -> sin(.), last -> linear.
    pout = o_ref.shape[-1]
    col = jax.lax.broadcasted_iota(jnp.int32, (1, pout), 1)
    is_sin = (col % out_features) < (out_features - 1)
    o_ref[...] = jnp.where(is_sin, jnp.sin(z), z).astype(o_ref.dtype)


def prepare_sine_activation_params(w, b, w0, b0, pack=None, param_dtype=None):
    """Once-at-init param prep (hoisted out of the per-call hot path).

    w:  (in_features, out_features - 1)   b:  (out_features - 1,)
    w0: (in_features, 1)                  b0: (1,)

    Builds the fused [w|w0] weight and then packs `pack` batch rows per output
    row via a block-diagonal weight so the kernel's output last-dim is
    lane-dense (pack*out_features, ideally >= 128).

    Returns (w_big, b_big, out_features, pack) with shapes
    (pack*in, pack*out) and (1, pack*out).
    """
    in_features = w.shape[0]
    out_features = w.shape[1] + 1
    if pack is None:
        pack = max(1, 128 // out_features)          # 32 -> 4 : 128-lane output

    w_full = jnp.concatenate([w, w0], axis=1)       # (in, out)
    b_full = jnp.concatenate([b, b0], axis=0)       # (out,)

    w_big = jax.scipy.linalg.block_diag(*([w_full] * pack))   # (pack*in, pack*out)
    b_big = jnp.tile(b_full, pack)[None, :]                    # (1, pack*out)

    if param_dtype is not None:
        w_big = w_big.astype(param_dtype)
        b_big = b_big.astype(param_dtype)

    del in_features  # (kept for readability)
    return w_big, b_big, out_features, pack


def sine_activation(tau, w_big, b_big, out_features, pack,
                    *, out_dtype=None, tb_max=8192):
    """Pallas equivalent of SineActivation.forward (dropout in eval mode).

    tau:    (B, in_features)          — any float dtype (bf16 halves HBM reads)
    w_big:  (pack*in, pack*out)        block-diagonal fused weight
    b_big:  (1, pack*out)              tiled fused bias
    returns (B, out_features) in `out_dtype` (default: tau.dtype;
            pass jnp.bfloat16 to halve HBM write traffic).
    """
    B, in_features = tau.shape
    pin, pout = w_big.shape
    assert pin == pack * in_features and pout == pack * out_features
    if out_dtype is None:
        out_dtype = tau.dtype

    # --- pack `pack` batch rows per kernel row (free row-major reshape) ------
    b_rows = _round_up(B, pack)
    if b_rows != B:
        tau = jnp.pad(tau, ((0, b_rows - B), (0, 0)))
    bp = b_rows // pack
    tau_packed = tau.reshape(bp, pin)

    # --- batch tile: big enough to amortize per-step overhead, but always ----
    # --- >= 2 grid steps when possible so v7x's two TCs both get work. -------
    if bp <= 8:
        tb = bp                                   # full-extent block (always legal)
    else:
        tb = min(tb_max, _round_up(pl.cdiv(bp, 2), 8))
    grid = (pl.cdiv(bp, tb),)

    # --- per-generation-safe VMEM budget (conservative 128-lane padding) -----
    in_bytes = jnp.dtype(tau.dtype).itemsize
    o_bytes = jnp.dtype(out_dtype).itemsize
    w_bytes = jnp.dtype(w_big.dtype).itemsize
    tile_bytes = tb * 128 * (in_bytes + o_bytes)            # one tau + one out tile
    resident = 2 * (max(pin, 8) * max(pout, 128) + 8 * max(pout, 128)) * w_bytes
    vmem_limit = int(min(max(2 * tile_bytes + resident + (2 << 20), 16 << 20),
                         48 << 20))               # cap with headroom for v7x (64 MiB)

    kernel = functools.partial(_sine_t2v_kernel, out_features=out_features)

    cost = pl.CostEstimate(
        flops=2 * B * in_features * out_features,
        transcendentals=B * (out_features - 1),
        bytes_accessed=(B * in_features * in_bytes
                        + pin * pout * w_bytes
                        + B * out_features * o_bytes),
    )

    out_packed = pl.pallas_call(
        kernel,
        out_shape=jax.ShapeDtypeStruct((bp, pout), out_dtype),
        grid_spec=pl.GridSpec(
            grid=grid,
            in_specs=[
                # tau: tiled along packed-batch -> double-buffered DMA overlaps compute.
                pl.BlockSpec((tb, pin), lambda i: (i, 0)),
                # weights & bias: same block every step -> resident in VMEM.
                pl.BlockSpec((pin, pout), lambda i: (0, 0)),
                pl.BlockSpec((1, pout), lambda i: (0, 0)),
            ],
            out_specs=pl.BlockSpec((tb, pout), lambda i: (i, 0)),
        ),
        compiler_params=pltpu.CompilerParams(
            # Independent batch tiles: lets v7x's two TensorCores split the grid.
            dimension_semantics=("parallel",),
            vmem_limit_bytes=vmem_limit,
        ),
        cost_estimate=cost,
    )(tau_packed, w_big, b_big)

    out = out_packed.reshape(b_rows, out_features)
    if b_rows != B:
        out = out[:B]
    return out


def _reference(tau, w, b, w0, b0):
    v1 = jnp.sin(tau @ w + b)
    v2 = tau @ w0 + b0
    return jnp.concatenate([v1, v2], axis=-1)


if __name__ == "__main__":
    key = jax.random.PRNGKey(0)
    k_tau, k_w, k_b, k_w0, k_b0, k_tau2, k_tau3 = jax.random.split(key, 7)

    B = 8               # small batch of time steps
    in_features = 4
    out_features = 32

    tau = jax.random.normal(k_tau, (B, in_features), dtype=jnp.float32)
    w = jax.random.normal(k_w, (in_features, out_features - 1), dtype=jnp.float32)
    b = jax.random.normal(k_b, (out_features - 1,), dtype=jnp.float32)
    w0 = jax.random.normal(k_w0, (in_features, 1), dtype=jnp.float32)
    b0 = jax.random.normal(k_b0, (1,), dtype=jnp.float32)

    # Hoisted once-at-init fusion + block-diagonal lane packing.
    w_big, b_big, out_f, pack = prepare_sine_activation_params(w, b, w0, b0)

    # Small-batch check (single tile, lane-packed output).
    out = sine_activation(tau, w_big, b_big, out_f, pack)
    jax.block_until_ready(out)
    ref = _reference(tau, w, b, w0, b0)
    assert out.shape == (B, out_features), out.shape
    assert jnp.allclose(out, ref, atol=1e-5, rtol=1e-5), float(jnp.abs(out - ref).max())

    # Non-multiple-of-pack batch: exercises the pad/slice path.
    B2 = 10
    tau2 = jax.random.normal(k_tau2, (B2, in_features), dtype=jnp.float32)
    out2 = sine_activation(tau2, w_big, b_big, out_f, pack)
    jax.block_until_ready(out2)
    ref2 = _reference(tau2, w, b, w0, b0)
    assert out2.shape == (B2, out_features), out2.shape
    assert jnp.allclose(out2, ref2, atol=1e-5, rtol=1e-5), float(jnp.abs(out2 - ref2).max())

    # Larger batch: exercises the multi-step grid (>=2 tiles, ragged tail).
    B3 = 3000
    tau3 = jax.random.normal(k_tau3, (B3, in_features), dtype=jnp.float32)
    out3 = sine_activation(tau3, w_big, b_big, out_f, pack)
    jax.block_until_ready(out3)
    ref3 = _reference(tau3, w, b, w0, b0)
    assert out3.shape == (B3, out_features), out3.shape
    assert jnp.allclose(out3, ref3, atol=1e-4, rtol=1e-5), float(jnp.abs(out3 - ref3).max())

    print("KERNEL_OK")
</pallas_src>

<mosaic_0001>
module attributes {stable_mosaic.version = 11 : i64} {
  func.func @_sine_t2v_kernel(%arg0: i32, %arg1: memref<2x16xf32, #tpu.memory_space<vmem>>, %arg2: memref<16x128xf32, #tpu.memory_space<vmem>>, %arg3: memref<1x128xf32, #tpu.memory_space<vmem>>, %arg4: memref<2x128xf32, #tpu.memory_space<vmem>>) attributes {dimension_semantics = [#tpu.dimension_semantics<parallel>], iteration_bounds = array<i64: 1>, scalar_prefetch = 0 : i64, scratch_operands = 0 : i64, tpu.core_type = #tpu.core_type<tc>, window_params = [{transform_indices = @transform_0, window_bounds = array<i64: 2, 16>}, {pipeline_mode = #tpu.pipeline_mode<synchronous>, transform_indices = @transform_1, window_bounds = array<i64: 16, 128>}, {pipeline_mode = #tpu.pipeline_mode<synchronous>, transform_indices = @transform_2, window_bounds = array<i64: 1, 128>}, {transform_indices = @transform_3, window_bounds = array<i64: 2, 128>}]} {
    %c0 = arith.constant 0 : index
    %c0_0 = arith.constant 0 : index
    %0 = vector.load %arg1[%c0, %c0_0] : memref<2x16xf32, #tpu.memory_space<vmem>>, vector<2x16xf32>
    %c0_1 = arith.constant 0 : index
    %c0_2 = arith.constant 0 : index
    %1 = vector.load %arg2[%c0_1, %c0_2] : memref<16x128xf32, #tpu.memory_space<vmem>>, vector<16x128xf32>
    %cst = arith.constant dense<0.000000e+00> : vector<2x128xf32>
    %2 = tpu.matmul %0, %1, %cst {dimension_numbers = #tpu.dot_dimension_numbers<[1], [0], [0], [1], [0, 0, 1, 1], [], []>} : vector<2x16xf32>, vector<16x128xf32>, vector<2x128xf32> -> vector<2x128xf32>
    %c0_3 = arith.constant 0 : index
    %c0_4 = arith.constant 0 : index
    %3 = vector.load %arg3[%c0_3, %c0_4] : memref<1x128xf32, #tpu.memory_space<vmem>>, vector<1x128xf32>
    %4 = vector.broadcast %3 : vector<1x128xf32> to vector<2x128xf32>
    %5 = arith.addf %2, %4 : vector<2x128xf32>
    %6 = tpu.iota {dimensions = array<i32: 1>} : vector<1x128xi32>
    %c32_i32 = arith.constant 32 : i32
    %c0_i32 = arith.constant 0 : i32
    %7 = arith.cmpi eq, %c32_i32, %c0_i32 : i32
    %c1_i32 = arith.constant 1 : i32
    %8 = arith.select %7, %c1_i32, %c32_i32 : i32
    %9 = vector.broadcast %8 : i32 to vector<1x128xi32>
    %10 = arith.remsi %6, %9 : vector<1x128xi32>
    %c0_i32_5 = arith.constant 0 : i32
    %11 = vector.broadcast %c0_i32_5 : i32 to vector<1x128xi32>
    %12 = arith.cmpi ne, %10, %11 : vector<1x128xi32>
    %c0_i32_6 = arith.constant 0 : i32
    %13 = vector.broadcast %c0_i32_6 : i32 to vector<1x128xi32>
    %14 = arith.cmpi slt, %10, %13 : vector<1x128xi32>
    %c0_i32_7 = arith.constant 0 : i32
    %15 = arith.cmpi slt, %8, %c0_i32_7 : i32
    %16 = vector.broadcast %15 : i1 to vector<1x128xi1>
    %17 = vector.broadcast %16 : vector<1x128xi1> to vector<1x128xi1>
    %18 = arith.xori %14, %17 : vector<1x128xi1>
    %19 = arith.andi %18, %12 : vector<1x128xi1>
    %20 = vector.broadcast %8 : i32 to vector<1x128xi32>
    %21 = arith.addi %10, %20 : vector<1x128xi32>
    %22 = arith.select %19, %21, %10 : vector<1x128xi1>, vector<1x128xi32>
    %c31_i32 = arith.constant 31 : i32
    %23 = vector.broadcast %c31_i32 : i32 to vector<1x128xi32>
    %24 = arith.cmpi slt, %22, %23 : vector<1x128xi32>
    %25 = math.sin %5 : vector<2x128xf32>
    %26 = vector.shape_cast %24 : vector<1x128xi1> to vector<1x128xi1>
    %27 = vector.broadcast %26 : vector<1x128xi1> to vector<2x128xi1>
    %28 = arith.select %27, %25, %5 : vector<2x128xi1>, vector<2x128xf32>
    %c0_8 = arith.constant 0 : index
    %c0_9 = arith.constant 0 : index
    %29 = vector.load %arg4[%c0_8, %c0_9] : memref<2x128xf32, #tpu.memory_space<vmem>>, vector<2x128xf32>
    tpu.vector_store %arg4[%c0_8, %c0_9], %28 {strides = array<i32>} : memref<2x128xf32, #tpu.memory_space<vmem>>, vector<2x128xf32>,
    return
  }
  func.func @transform_0(%arg0: i32) -> (i32, i32) {
    %c0_i32 = arith.constant 0 : i32
    %c0_i32_0 = arith.constant 0 : i32
    return %arg0, %c0_i32 : i32, i32
  }
  func.func @transform_1(%arg0: i32) -> (i32, i32) {
    %c0_i32 = arith.constant 0 : i32
    %c0_i32_0 = arith.constant 0 : i32
    %c0_i32_1 = arith.constant 0 : i32
    return %c0_i32, %c0_i32_0 : i32, i32
  }
  func.func @transform_2(%arg0: i32) -> (i32, i32) {
    %c0_i32 = arith.constant 0 : i32
    %c0_i32_0 = arith.constant 0 : i32
    %c0_i32_1 = arith.constant 0 : i32
    return %c0_i32, %c0_i32_0 : i32, i32
  }
  func.func @transform_3(%arg0: i32) -> (i32, i32) {
    %c0_i32 = arith.constant 0 : i32
    %c0_i32_0 = arith.constant 0 : i32
    return %arg0, %c0_i32 : i32, i32
  }
}

</mosaic_0001>

<bundles_post_ra>
// kernel: tpu_custom_call.1
= control target key start
LH: loop header
LB: loop body
LE: loop exit
PB: predicated region body
PF: predicated region fallthrough
CT: control target
= control target key end

     0   :  { %8 = vsyncpa [#allocation3], 0  ;;  %s434_s0 = inlined_call_operand.hbm [shape: f32[2,16], index: 0, kind: input, shape index: {}]   ;;  %s435_s1 = inlined_call_operand.hbm [shape: f32[16,128], index: 1, kind: input, shape index: {}]   ;;  %s436_s2 = inlined_call_operand.vmem [shape: f32[1,128], index: 2, kind: input, shape index: {}]   ;;  %s437_s3 = inlined_call_operand.hbm [shape: f32[2,128], index: 3, kind: output, shape index: {}]  }
   0x1   :  { %9 = vsyncpa [#allocation6], 0 }
   0x2   :  { %10 = vsyncpa [#allocation4], 0  ;;  %s367_s12 = smov [#allocation2]   ;;  %s368_s14 = smov [#allocation5]  }
   0x3   :  { %s17_s13 = sshll.u32 %s367_s12, 4  ;;  %s26_s15 = sshll.u32 %s368_s14, 4  ;;  %s18_s13 = int_to_ptr.vmem [resolvable:$true] %s17_s13  ;;  %s27_s15 = int_to_ptr.vmem [resolvable:$true] %s26_s15 }
   0x4   :  { %s309_s16 = scalar_lea.vmem %s18_s13, 32  ;;  %p314_p1 = scmp.lt.s32.totalorder %s18_s13, %s18_s13 }
   0x5   :  { %p310_p0 = scmp.ne.s32.totalorder %s18_s13, %s309_s16  ;;  %p315_p2 = scmp.lt.s32.totalorder %s309_s16, %s309_s16 }
   0x7   :  { %p316_p3 = por %p315_p2, %p314_p1 }
   0x9   :  { %p317_p4 = pnand %p316_p3, %p310_p0 }
   0xb   :  { %320 = shalt.err (!%p317_p4)
}
   0xc   :  { %20 = dma.hbm_to_vmem [thread:$0]  %s434_s0, 32, %s18_s13, [#allocation3]  }
   0xd   :  { %s329_s19 = scalar_lea.vmem %s27_s15, 256  ;;  %p334_p6 = scmp.lt.s32.totalorder %s27_s15, %s27_s15 }
   0xe   :  { %p330_p5 = scmp.ne.s32.totalorder %s27_s15, %s329_s19  ;;  %p335_p7 = scmp.lt.s32.totalorder %s329_s19, %s329_s19 }
  0x10   :  { %p336_p8 = por %p335_p7, %p334_p6 }
  0x12   :  { %p337_p9 = pnand %p336_p8, %p330_p5 }
  0x14   :  { %340 = shalt.err (!%p337_p9)
}
  0x15   :  { %s369_s20 = smov 128   ;;  %s370_s21 = smov 8  }
  0x16   :  { %32 = dma.hbm_to_vmem [thread:$0]  %s435_s1, 256, %s27_s15, [#allocation6], %s369_s20, %s369_s20, %s370_s21  }
  0x17   :  { %361 = dma.done.wait [#allocation3], 32  }
  0x18   :  { %362 = vsyncadd [#allocation3], 4294967264 }
  0x19   :  { %363 = dma.done.wait [#allocation6], 256  }
  0x1a   :  { %364 = vsyncadd [#allocation6], 4294967040  ;;  %v371_v0 = vmov 0.0   ;;  %vm372_vm0 = vmmov 0   ;;  %v43_v1 = vld [vmem:[#allocation5 + $0x8] sm:$0xff]  ;;  %v42_v2 = vld [vmem:[#allocation5] sm:$0xff] }
  0x1b   :  { %273 = vmatprep.subr.mxu0 %v371_v0  ;;  %277 = vmatprep.mubr.msk.f32.mxu0 %vm372_vm0, %v371_v0  ;;  %v41_v3 = vld [vmem:[#allocation2] sm:$0x3]  ;;  %vm51_vm1 = vcmask 130048   ;;  %v373_v19 = vmov 2102212464   ;;  %s379_s1 = smov [#allocation7]  }
  0x1c   :  { %274 = vmatpush3.msra.mxu0 %v43_v1  ;;  %v264_v4 = vld [vmem:[%s436_s2] ss:$0 sm:$0xff]  ;;  %v374_v21 = vmov 920167782   ;;  %v375_v25 = vmov 1326507024  }
  0x1d   :  { %275 = vmatprep.subr.mxu0 %v371_v0  ;;  %v376_v27 = vmov 683565275   ;;  %v377_v29 = vmov 2475754826   ;;  %v378_v32 = vmov 2131351028  }
  0x1e   :  { %276 = vmatpush3.msra.mxu0 %v42_v2  ;;  %s254_s2 = sshll.u32 %s379_s1, 4  ;;  %s255_s2 = int_to_ptr.vmem [resolvable:$true] %s254_s2 }
  0x1f   :  { %278 = vmatmul.mubr.msk.f32.vlgmr.msra.gmra.mxu0 %vm51_vm1, %v41_v3  ;;  %s341_s25 = scalar_lea.vmem %s255_s2, 32  ;;  %p346_p11 = scmp.lt.s32.totalorder %s255_s2, %s255_s2 }
  0x20   :  { %p342_p10 = scmp.ne.s32.totalorder %s255_s2, %s341_s25  ;;  %p347_p12 = scmp.lt.s32.totalorder %s341_s25, %s341_s25 }
  0x22   :  { %p348_p13 = por %p347_p12, %p346_p11 }
  0x24   :  { %p349_p0 = pnand %p348_p13, %p342_p10 }
  0xdf   :  { %v121_v5 = vpop.f32.mrf.mxu0 }
  0xe0   :  { %v409_v6 = vadd.f32 %v264_v4, %v121_v5 }
  0xe1   :  { %v279_v7 = vpop.f32.mrf.mxu0 }
  0xe2   :  { %v143_v8 = vand.u32 2139095040, %v409_v6  ;;  %v140_v9 = vand.u32 2147483647, %v409_v6  ;;  %vm142_vm9 = vcmp.lt.s32.totalorder %v409_v6, 0  ;;  %vm232_vm15 = vweird.f32 %v409_v6 }
  0xe4   :  { %v144_v10 = vshrl.u32 %v143_v8, 23  ;;  %v147_v12 = vand.u32 8388607, %v140_v9  ;;  %vm141_vm10 = vcmp.le.f32.partialorder %v140_v9, 0.7853982 }
  0xe6   :  { %v266_v11 = vadd.s32 4294967169, %v144_v10  ;;  %v148_v15 = vor.u32 8388608, %v147_v12 }
  0xe8   :  { %v150_v13 = vadd.s32 1, %v266_v11  ;;  %v188_v23 = vshll.u32 %v148_v15, 8 }
  0xea   :  { %vm151_vm2 = vcmp.gt.s32.totalorder %v150_v13, 0 }
  0xeb   :  { %v152_v14 = vsel %vm151_vm2, %v150_v13, 0 }
  0xec   :  { %v154_v16 = vand.u32 31, %v152_v14  ;;  %v153_v17 = vshrl.u32 %v152_v14, 5 }
  0xee   :  { %v155_v18 = vsub.s32 32, %v154_v16  ;;  %v166_v20 = vshll.u32 %v373_v19, %v154_v16  ;;  %v169_v22 = vshll.u32 %v374_v21, %v154_v16  ;;  %v157_v28 = vshll.u32 %v376_v27, %v154_v16 }
  0xef   :  { %v160_v31 = vshll.u32 %v377_v29, %v154_v16  ;;  %v163_v34 = vshll.u32 %v378_v32, %v154_v16  ;;  %vm175_vm3 = vcmp.lt.s32.totalorder %v153_v17, 4  ;;  %vm172_vm4 = vcmp.lt.s32.totalorder %v153_v17, 1 }
  0xf0   :  { %v167_v24 = vshrl.u32 %v374_v21, %v155_v18  ;;  %v170_v26 = vshrl.u32 %v375_v25, %v155_v18  ;;  %v158_v30 = vshrl.u32 %v377_v29, %v155_v18  ;;  %v161_v33 = vshrl.u32 %v378_v32, %v155_v18 }
  0xf1   :  { %v164_v35 = vshrl.u32 %v373_v19, %v155_v18  ;;  %v156_v39 = vshrl.u32 %v376_v27, %v155_v18  ;;  %vm173_vm5 = vcmp.lt.s32.totalorder %v153_v17, 2  ;;  %vm174_vm6 = vcmp.lt.s32.totalorder %v153_v17, 3 }
  0xf2   :  { %v168_v36 = vor.u32 %v167_v24, %v166_v20  ;;  %v171_v37 = vor.u32 %v170_v26, %v169_v22  ;;  %v159_v38 = vor.u32 %v158_v30, %v157_v28  ;;  %v162_v40 = vor.u32 %v161_v33, %v160_v31 }
  0xf3   :  { %v165_v41 = vor.u32 %v164_v35, %v163_v34  ;;  %v125_v27 = vlaneseq }
  0xf4   :  { %v181_v42 = vsel %vm175_vm3, %v168_v36, 920167782  ;;  %v185_v43 = vsel %vm175_vm3, %v171_v37, 1326507024  ;;  %v180_v45 = vsel %vm172_vm4, %v159_v38, %v162_v40  ;;  %v176_v48 = vsel %vm172_vm4, %v156_v39, %v159_v38 }
  0xf5   :  { %v177_v44 = vsel %vm175_vm3, %v165_v41, 2102212464  ;;  %v182_v46 = vsel %vm174_vm6, %v165_v41, %v181_v42  ;;  %v184_v47 = vsel %vm172_vm4, %v162_v40, %v165_v41  ;;  %v186_v51 = vsel %vm174_vm6, %v168_v36, %v185_v43 }
  0xf6   :  { %v178_v49 = vsel %vm174_vm6, %v162_v40, %v177_v44  ;;  %v183_v50 = vsel %vm173_vm5, %v180_v45, %v182_v46  ;;  %v187_v52 = vsel %vm173_vm5, %v184_v47, %v186_v51  ;;  %v126_v29 = vand.u32 127, %v125_v27 }
  0xf7   :  { %v415_v53 = vmul.u32.u64.low %v188_v23, %v183_v50  ;;  %v416_v54 = vmul.u32.u64.high %v188_v23, %v183_v50, %v415_v53  ;;  %v418_v55 = vmul.u32.u64.low %v188_v23, %v187_v52  ;;  %v419_v56 = vmul.u32.u64.high %v188_v23, %v187_v52, %v418_v55 }
  0xf8   :  { %v179_v57 = vsel %vm173_vm5, %v176_v48, %v178_v49  ;;  %v131_v32 = vand.u32 31, %v126_v29 }
  0xf9   :  { %v198_v58 = vadd.s32 1, %v416_v54  ;;  %v195_v59 = vmul.u32 %v188_v23, %v179_v57  ;;  %vm197_vm7 = vc.u32 %v419_v56, %v415_v53  ;;  %v196_v8 = vadd.s32 %v415_v53, %v419_v56 }
  0xfa   :  { %vm139_vm13 = vcmp.lt.s32.totalorder %v131_v32, 31 }
  0xfb   :  { %v199_v60 = vsel %vm197_vm7, %v198_v58, %v416_v54 }
  0xfc   :  { %v200_v61 = vadd.s32 %v199_v60, %v195_v59 }
  0xfe   :  { %v201_v62 = vadd.s32 536870912, %v200_v61 }
 0x100   :  { %v202_v63 = vshrl.u32 %v201_v62, 30 }
 0x102   :  { %v203_v0 = vshll.u32 %v202_v63, 30  ;;  %v226_v22 = vsub.s32 4, %v202_v63 }
 0x104   :  { %v204_v1 = vsub.s32 %v200_v61, %v203_v0  ;;  %v227_v25 = vsel %vm142_vm9, %v226_v22, %v202_v63 }
 0x105   :  { %v229_v26 = vsel %vm141_vm10, 0, %v227_v25 }
 0x106   :  { %v206_v2 = vsub.s32 0, %v204_v1  ;;  %v233_v28 = vadd.s32 3, %v229_v26 }
 0x108   :  { %v267_v3 = vmin.u32 %v206_v2, %v204_v1  ;;  %v234_v30 = vand.u32 3, %v233_v28 }
 0x10a   :  { %v208_v4 = vclz %v267_v3  ;;  %vm239_vm11 = vcmp.eq.s32.totalorder %v234_v30, 2  ;;  %vm236_vm12 = vcmp.eq.s32.totalorder %v234_v30, 0  ;;  %vm235_vm14 = vcmp.lt.s32.totalorder %v234_v30, 2 }
 0x10c   :  { %v268_v5 = vadd.s32 4294967294, %v208_v4 }
 0x10e   :  { %vm269_vm8 = vcmp.lt.s32.totalorder %v268_v5, 0 }
 0x10f   :  { %v211_v7 = vsel %vm269_vm8, 0, %v268_v5 }
 0x110   :  { %v212_v10 = vsub.s32 32, %v211_v7  ;;  %v216_v11 = vsub.s32 4294967266, %v211_v7  ;;  %v213_v12 = vshll.u32 %v204_v1, %v211_v7 }
 0x112   :  { %v214_v13 = vshrl.u32 %v196_v8, %v212_v10  ;;  %v217_v14 = vadd.s32 127, %v216_v11 }
 0x114   :  { %v215_v15 = vor.u32 %v214_v13, %v213_v12  ;;  %v218_v16 = vshll.u32 %v217_v14, 23 }
 0x116   :  { %v219_v17 = vor.u32 4788187, %v218_v16  ;;  %v222_v19 = vcvt.s32.f32 %v215_v15 }
 0x118   :  { %v220_v18 = vand.u32 2147483647, %v219_v17 }
 0x11a   :  { %v223_v20 = vmul.f32 %v222_v19, %v220_v18 }
 0x11c   :  { %v224_v21 = vxor.u32 2147483648, %v223_v20 }
 0x11e   :  { %v225_v23 = vsel %vm142_vm9, %v224_v21, %v223_v20 }
 0x11f   :  { %v228_v24 = vsel %vm141_vm10, %v409_v6, %v225_v23 }
 0x120   :  { %297 = vcosq.f32 %v228_v24 }
 0x121   :  { %299 = vsinq.f32 %v228_v24 }
 0x12d   :  { %v298_v31 = vpop.eup %297 }
 0x12e   :  { %v300_v33 = vpop.eup %299  ;;  %v240_v34 = vxor.u32 2147483648, %v298_v31 }
 0x12f   :  { %v237_v35 = vxor.u32 2147483648, %v300_v33 }
 0x130   :  { %v241_v36 = vsel %vm239_vm11, %v240_v34, %v300_v33 }
 0x131   :  { %v238_v9 = vsel %vm236_vm12, %v298_v31, %v237_v35 }
 0x132   :  { %v242_v37 = vsel %vm235_vm14, %v238_v9, %v241_v36 }
 0x133   :  { %v243_v38 = vsel %vm232_vm15, nan, %v242_v37 }
 0x134   :  { %v246_v39 = vsel %vm139_vm13, %v243_v38, %v409_v6 }
 0x135   :  { %247 = vst [vmem:[#allocation7] sm:$0x3] %v246_v39 }
 0x136   :  { %352 = shalt.err (!%p349_p0)
}
 0x137   :  { %257 = dma.vmem_to_hbm [thread:$0]  %s255_s2, 32, %s437_s3, [#allocation4]  }
 0x138   :  { %365 = dma.done.wait [#allocation4], 32  }
 0x139   :  { %366 = vsyncadd [#allocation4], 4294967264 }
 0x13a   :  { %261 = vsyncpa [#allocation3], 1 }
 0x13b   :  { %262 = vsyncpa [#allocation6], 1 }
 0x13c   :  { %263 = vsyncpa [#allocation4], 1 }

</bundles_post_ra>
